<compile_context>
chip_gen: v7x
topology: tpu7x:2x2x1
jax: 0.10.0
libtpu: 0.0.40
codegen_flags: <defaults>
</compile_context>

<pallas_src>
import functools

import jax
import jax.numpy as jnp
import numpy as np
from jax.experimental import pallas as pl
from jax.experimental.pallas import tpu as pltpu

BN_EPS = 1e-5  # PyTorch BatchNorm1d default eps
MAX_ROW_TILE = 2048
VMEM_LIMIT = 64 * 1024 * 1024


def _row_tile(n, max_tile=MAX_ROW_TILE):
    """Largest divisor of n that is <= max_tile (multiple of 8 when tiling)."""
    if n <= max_tile:
        return n
    start = max_tile - (max_tile % 8)
    for t in range(start, 7, -8):
        if n % t == 0:
            return t
    return n  # no friendly divisor: fall back to a single block


# ----------------------------------------------------------------------------
# Pallas kernels
# ----------------------------------------------------------------------------
def _gated_block_kernel(xs_ref, x_ref, ws_ref, wc_ref, bfg_ref, w1_ref, b1_ref,
                        res_ref, stats_ref):
    """Pass 1 of a GatedResidualBlock on one row tile.

    xs_ref : [TN, Cin]  x delayed by `dilation` (zero-padded causally)
    x_ref  : [TN, Cin]  current x
    ws_ref : [Cin, 2H]  fused (f|g) taps for the delayed sample
    wc_ref : [Cin, 2H]  fused (f|g) taps for the current sample
    bfg_ref: [1, 2H]    fused (f|g) bias
    w1_ref : [H, H], b1_ref: [1, H]  1x1 conv
    res_ref  : [TN, H]  pre-BatchNorm residual (skip + x)
    stats_ref: [1, 2, H] per-tile (sum, sum_of_squares) of the residual
    """
    xs = xs_ref[...]
    x = x_ref[...]
    cin = x.shape[-1]
    if cin == 1:
        # Degenerate contraction: a lane-broadcast multiply (exact f32, VPU).
        fg = xs * ws_ref[...] + x * wc_ref[...] + bfg_ref[...]
    else:
        fg = (jnp.dot(xs, ws_ref[...], preferred_element_type=jnp.float32)
              + jnp.dot(x, wc_ref[...], preferred_element_type=jnp.float32)
              + bfg_ref[...])
    h = fg.shape[-1] // 2
    gated = fg[:, :h] * jax.nn.sigmoid(fg[:, h:])
    skip = jnp.dot(gated, w1_ref[...], preferred_element_type=jnp.float32) + b1_ref[...]
    residual = skip + x                      # broadcasts over channels if Cin == 1
    res_ref[...] = residual
    ssum = jnp.sum(residual, axis=0, keepdims=True)
    ssq = jnp.sum(residual * residual, axis=0, keepdims=True)
    stats_ref[0, :, :] = jnp.concatenate([ssum, ssq], axis=0)


def _bn_apply_kernel(x_ref, ss_ref, o_ref):
    """y = x * scale + shift per channel (BatchNorm affine applied per tile)."""
    o_ref[...] = x_ref[...] * ss_ref[0:1, :] + ss_ref[1:2, :]


def _matmul_bias_kernel(x_ref, w_ref, b_ref, o_ref, *, relu):
    y = jnp.dot(x_ref[...], w_ref[...], preferred_element_type=jnp.float32) + b_ref[...]
    if relu:
        y = jnp.maximum(y, 0.0)
    o_ref[...] = y


# ----------------------------------------------------------------------------
# Pallas wrappers
# ----------------------------------------------------------------------------
def gated_block_pass1(x_shift, x, w_shift, w_cur, b_fg, w1, b1):
    n, cin = x.shape
    h = w1.shape[0]
    tn = _row_tile(n)
    num_tiles = n // tn

    flops = 2 * n * (2 * cin) * (2 * h) + 2 * n * h * h + 6 * n * h
    bytes_acc = 4 * (2 * n * cin + n * h + num_tiles * 2 * h
                     + w_shift.size + w_cur.size + b_fg.size + w1.size + b1.size)

    res, stats = pl.pallas_call(
        _gated_block_kernel,
        out_shape=(jax.ShapeDtypeStruct((n, h), jnp.float32),
                   jax.ShapeDtypeStruct((num_tiles, 2, h), jnp.float32)),
        grid_spec=pltpu.PrefetchScalarGridSpec(
            num_scalar_prefetch=0,
            grid=(num_tiles,),
            in_specs=[
                pl.BlockSpec((tn, cin), lambda i: (i, 0)),
                pl.BlockSpec((tn, cin), lambda i: (i, 0)),
                pl.BlockSpec((cin, 2 * h), lambda i: (0, 0)),
                pl.BlockSpec((cin, 2 * h), lambda i: (0, 0)),
                pl.BlockSpec((1, 2 * h), lambda i: (0, 0)),
                pl.BlockSpec((h, h), lambda i: (0, 0)),
                pl.BlockSpec((1, h), lambda i: (0, 0)),
            ],
            out_specs=(
                pl.BlockSpec((tn, h), lambda i: (i, 0)),
                pl.BlockSpec((1, 2, h), lambda i: (i, 0, 0)),
            ),
        ),
        compiler_params=pltpu.CompilerParams(
            dimension_semantics=("parallel",),
            vmem_limit_bytes=VMEM_LIMIT),
        cost_estimate=pl.CostEstimate(flops=int(flops), transcendentals=int(n * h),
                                      bytes_accessed=int(bytes_acc)),
    )(x_shift, x, w_shift, w_cur, b_fg, w1, b1)
    return res, stats


def bn_apply(x, scale_shift):
    n, h = x.shape
    tn = _row_tile(n)
    return pl.pallas_call(
        _bn_apply_kernel,
        out_shape=jax.ShapeDtypeStruct((n, h), jnp.float32),
        grid_spec=pltpu.PrefetchScalarGridSpec(
            num_scalar_prefetch=0,
            grid=(n // tn,),
            in_specs=[pl.BlockSpec((tn, h), lambda i: (i, 0)),
                      pl.BlockSpec((2, h), lambda i: (0, 0))],
            out_specs=pl.BlockSpec((tn, h), lambda i: (i, 0)),
        ),
        compiler_params=pltpu.CompilerParams(
            dimension_semantics=("parallel",),
            vmem_limit_bytes=VMEM_LIMIT),
    )(x, scale_shift)


def matmul_bias(x, w, b, relu=False, max_tile=MAX_ROW_TILE):
    n, k = x.shape
    co = w.shape[1]
    tn = min(n, max_tile)
    if tn < n:
        tn = max(8, (tn // 8) * 8)
    n_pad = -(-n // tn) * tn
    xp = x if n_pad == n else jnp.pad(x, ((0, n_pad - n), (0, 0)))

    out = pl.pallas_call(
        functools.partial(_matmul_bias_kernel, relu=relu),
        out_shape=jax.ShapeDtypeStruct((n_pad, co), jnp.float32),
        grid_spec=pltpu.PrefetchScalarGridSpec(
            num_scalar_prefetch=0,
            grid=(n_pad // tn,),
            in_specs=[pl.BlockSpec((tn, k), lambda i: (i, 0)),
                      pl.BlockSpec((k, co), lambda i: (0, 0)),
                      pl.BlockSpec((1, co), lambda i: (0, 0))],
            out_specs=pl.BlockSpec((tn, co), lambda i: (i, 0)),
        ),
        compiler_params=pltpu.CompilerParams(
            dimension_semantics=("parallel",),
            vmem_limit_bytes=VMEM_LIMIT),
        cost_estimate=pl.CostEstimate(
            flops=int(2 * n_pad * k * co), transcendentals=0,
            bytes_accessed=int(4 * (n_pad * k + n_pad * co + k * co + co))),
    )(xp, w, b)
    return out[:n] if n_pad != n else out


# ----------------------------------------------------------------------------
# Glue (reshapes / im2col / parameter setup) in plain JAX
# ----------------------------------------------------------------------------
def _im2col(x, kernel, stride):
    """x: (B, T, C) -> (B, L, kernel*C) with L = (T-kernel)//stride + 1."""
    b, t, c = x.shape
    l = (t - kernel) // stride + 1
    cols = [x[:, k:k + stride * (l - 1) + 1:stride, :] for k in range(kernel)]
    return jnp.concatenate(cols, axis=-1), l
    # TODO(synk): im2col stays in XLA; an in-kernel pl.ds strided read would
    # avoid the duplicated columns but the head is tiny relative to the stack.


def conv1d_head(x, w, b, kernel, stride, relu):
    cols, l = _im2col(x, kernel, stride)
    bsz = x.shape[0]
    out = matmul_bias(cols.reshape(bsz * l, -1), w, b, relu=relu)
    return out.reshape(bsz, l, -1)


def init_wavenet_params(key, num_channels, num_hidden, num_blocks, num_layers,
                        kernel_size):
    assert kernel_size == 2
    layers = []
    in_ch = num_channels
    for _b in range(num_blocks):
        for i in range(num_layers):
            key, k0, k1, k2, k3, k4 = jax.random.split(key, 6)
            s_conv = 1.0 / np.sqrt(in_ch * kernel_size)
            s_1x1 = 1.0 / np.sqrt(num_hidden)
            layers.append(dict(
                dilation=2 ** i,
                # fused (f|g) weights, split into delayed-tap and current-tap halves
                w_shift=jax.random.normal(k0, (in_ch, 2 * num_hidden), jnp.float32) * s_conv,
                w_cur=jax.random.normal(k1, (in_ch, 2 * num_hidden), jnp.float32) * s_conv,
                b_fg=jax.random.normal(k2, (1, 2 * num_hidden), jnp.float32) * s_conv,
                w1=jax.random.normal(k3, (num_hidden, num_hidden), jnp.float32) * s_1x1,
                b1=jax.random.normal(k4, (1, num_hidden), jnp.float32) * s_1x1,
                gamma=jnp.ones((1, num_hidden), jnp.float32),
                beta=jnp.zeros((1, num_hidden), jnp.float32),
            ))
            in_ch = num_hidden

    key, k0, k1, k2, k3, k4, k5 = jax.random.split(key, 7)
    head = dict(
        w_c1=jax.random.normal(k0, (4 * num_hidden, 64), jnp.float32) / np.sqrt(4 * num_hidden),
        b_c1=jax.random.normal(k1, (1, 64), jnp.float32) / np.sqrt(4 * num_hidden),
        w_c2=jax.random.normal(k2, (3 * 64, 32), jnp.float32) / np.sqrt(3 * 64),
        b_c2=jax.random.normal(k3, (1, 32), jnp.float32) / np.sqrt(3 * 64),
        w_cls=jax.random.normal(k4, (3 * 32, 1), jnp.float32) / np.sqrt(3 * 32),
        b_cls=jax.random.normal(k5, (1, 1), jnp.float32) / np.sqrt(3 * 32),
    )
    return dict(layers=layers, head=head)


def wavenet_forward(params, x, output_width):
    """x: (B, num_channels, T) NCL, like the PyTorch module.  Returns squeezed logits."""
    bsz, _c, t = x.shape
    assert t >= output_width, "sequence shorter than output_width (PyTorch uses 2048)"
    xt = jnp.transpose(x, (0, 2, 1)).astype(jnp.float32)     # (B, T, C)
    n = bsz * t
    cut = t - output_width
    n_layers = len(params["layers"])
    skips = None
    for li, lp in enumerate(params["layers"]):
        d = lp["dilation"]
        cin = xt.shape[-1]
        # causal delay by (kernel_size - 1) * dilation (kernel_size == 2)
        x_shift = jnp.pad(xt, ((0, 0), (d, 0), (0, 0)))[:, :t, :]
        res, stats = gated_block_pass1(
            x_shift.reshape(n, cin), xt.reshape(n, cin),
            lp["w_shift"], lp["w_cur"], lp["b_fg"], lp["w1"], lp["b1"])
        h = res.shape[-1]
        res_b = res.reshape(bsz, t, h)

        # skip = residual - x; only the narrowed window is ever consumed, so
        # the full skip tensor is never written to HBM.
        skip_win = res_b[:, cut:, :] - xt[:, cut:, :]
        skips = skip_win if skips is None else skips + skip_win

        if li + 1 < n_layers:
            # BatchNorm1d (training-mode batch stats over all N = B*T rows):
            # fold per-tile partial sums into a per-channel scale/shift.
            s = jnp.sum(stats, axis=0)                        # [2, H]
            mean = s[0:1] / n
            var = jnp.maximum(s[1:2] / n - mean * mean, 0.0)
            inv = jax.lax.rsqrt(var + BN_EPS)
            scale = lp["gamma"] * inv
            shift = lp["beta"] - mean * scale
            xt = bn_apply(res, jnp.concatenate([scale, shift], axis=0)).reshape(bsz, t, h)
        # else: the last layer's normalized residual is never consumed downstream.

    hd = params["head"]
    y = conv1d_head(skips, hd["w_c1"], hd["b_c1"], kernel=4, stride=2, relu=True)
    y = conv1d_head(y, hd["w_c2"], hd["b_c2"], kernel=3, stride=1, relu=True)
    y = conv1d_head(y, hd["w_cls"], hd["b_cls"], kernel=3, stride=1, relu=False)
    return jnp.squeeze(y)


# ----------------------------------------------------------------------------
# Pure-JAX reference (same math, no Pallas) for a correctness check
# ----------------------------------------------------------------------------
def _ref_block(xs, x, lp):
    cin = x.shape[-1]
    if cin == 1:
        fg = xs * lp["w_shift"] + x * lp["w_cur"] + lp["b_fg"]
    else:
        fg = xs @ lp["w_shift"] + x @ lp["w_cur"] + lp["b_fg"]
    h = fg.shape[-1] // 2
    gated = fg[:, :h] * jax.nn.sigmoid(fg[:, h:])
    skip = gated @ lp["w1"] + lp["b1"]
    residual = skip + x
    mean = jnp.mean(residual, axis=0, keepdims=True)
    var = jnp.mean((residual - mean) ** 2, axis=0, keepdims=True)
    res_bn = lp["gamma"] * (residual - mean) * jax.lax.rsqrt(var + BN_EPS) + lp["beta"]
    return res_bn, skip


def reference_forward(params, x, output_width):
    bsz, _c, t = x.shape
    xt = jnp.transpose(x, (0, 2, 1)).astype(jnp.float32)
    n = bsz * t
    skips = None
    for lp in params["layers"]:
        d = lp["dilation"]
        cin = xt.shape[-1]
        x_shift = jnp.pad(xt, ((0, 0), (d, 0), (0, 0)))[:, :t, :]
        res, skip = _ref_block(x_shift.reshape(n, cin), xt.reshape(n, cin), lp)
        h = res.shape[-1]
        xt = res.reshape(bsz, t, h)
        skip = skip.reshape(bsz, t, h)[:, t - output_width:, :]
        skips = skip if skips is None else skips + skip

    def head(xx, w, b, k, s, relu):
        cols, l = _im2col(xx, k, s)
        y = cols.reshape(bsz * l, -1) @ w + b
        if relu:
            y = jnp.maximum(y, 0.0)
        return y.reshape(bsz, l, -1)

    hd = params["head"]
    y = head(skips, hd["w_c1"], hd["b_c1"], 4, 2, True)
    y = head(y, hd["w_c2"], hd["b_c2"], 3, 1, True)
    y = head(y, hd["w_cls"], hd["b_cls"], 3, 1, False)
    return jnp.squeeze(y)


# ----------------------------------------------------------------------------
if __name__ == "__main__":
    # Small config consistent with the module (PyTorch defaults scaled down).
    # self.output_width is hardcoded to 2048 in the PyTorch __init__; it is
    # parameterized here so small shapes remain runnable with identical math.
    num_channels = 1
    num_hidden = 32
    num_blocks = 2
    num_layers = 3
    kernel_size = 2
    output_width = 16
    B, T = 2, 32          # x: (B, num_channels, T), NCL like nn.Conv1d input

    key = jax.random.PRNGKey(0)
    key, xkey = jax.random.split(key)
    x = jax.random.normal(xkey, (B, num_channels, T), jnp.float32)

    params = init_wavenet_params(key, num_channels, num_hidden, num_blocks,
                                 num_layers, kernel_size)

    out = wavenet_forward(params, x, output_width)
    out = jax.block_until_ready(out)

    ref = reference_forward(params, x, output_width)
    assert out.shape == ref.shape, (out.shape, ref.shape)
    np.testing.assert_allclose(np.asarray(out), np.asarray(ref),
                               rtol=1e-4, atol=1e-4)

    # TODO(synk): BatchNorm running-stat updates (stateful buffers) are not
    # modeled; they do not affect the training-mode forward output.
    print("KERNEL_OK")
</pallas_src>

<mosaic_0001>
module attributes {stable_mosaic.version = 11 : i64} {
  func.func @_gated_block_kernel(%arg0: i32, %arg1: memref<64x1xf32, #tpu.memory_space<vmem>>, %arg2: memref<64x1xf32, #tpu.memory_space<vmem>>, %arg3: memref<1x64xf32, #tpu.memory_space<vmem>>, %arg4: memref<1x64xf32, #tpu.memory_space<vmem>>, %arg5: memref<1x64xf32, #tpu.memory_space<vmem>>, %arg6: memref<32x32xf32, #tpu.memory_space<vmem>>, %arg7: memref<1x32xf32, #tpu.memory_space<vmem>>, %arg8: memref<64x32xf32, #tpu.memory_space<vmem>>, %arg9: memref<1x2x32xf32, #tpu.memory_space<vmem>>) attributes {dimension_semantics = [#tpu.dimension_semantics<parallel>], iteration_bounds = array<i64: 1>, scalar_prefetch = 0 : i64, scratch_operands = 0 : i64, tpu.core_type = #tpu.core_type<tc>, window_params = [{transform_indices = @transform_0, window_bounds = array<i64: 64, 1>}, {transform_indices = @transform_1, window_bounds = array<i64: 64, 1>}, {pipeline_mode = #tpu.pipeline_mode<synchronous>, transform_indices = @transform_2, window_bounds = array<i64: 1, 64>}, {pipeline_mode = #tpu.pipeline_mode<synchronous>, transform_indices = @transform_3, window_bounds = array<i64: 1, 64>}, {pipeline_mode = #tpu.pipeline_mode<synchronous>, transform_indices = @transform_4, window_bounds = array<i64: 1, 64>}, {pipeline_mode = #tpu.pipeline_mode<synchronous>, transform_indices = @transform_5, window_bounds = array<i64: 32, 32>}, {pipeline_mode = #tpu.pipeline_mode<synchronous>, transform_indices = @transform_6, window_bounds = array<i64: 1, 32>}, {transform_indices = @transform_7, window_bounds = array<i64: 64, 32>}, {transform_indices = @transform_8, window_bounds = array<i64: 1, 2, 32>}]} {
    %c0 = arith.constant 0 : index
    %c0_0 = arith.constant 0 : index
    %0 = vector.load %arg1[%c0, %c0_0] : memref<64x1xf32, #tpu.memory_space<vmem>>, vector<64x1xf32>
    %c0_1 = arith.constant 0 : index
    %c0_2 = arith.constant 0 : index
    %1 = vector.load %arg2[%c0_1, %c0_2] : memref<64x1xf32, #tpu.memory_space<vmem>>, vector<64x1xf32>
    %c0_3 = arith.constant 0 : index
    %c0_4 = arith.constant 0 : index
    %2 = vector.load %arg3[%c0_3, %c0_4] : memref<1x64xf32, #tpu.memory_space<vmem>>, vector<1x64xf32>
    %3 = vector.broadcast %0 : vector<64x1xf32> to vector<64x64xf32>
    %4 = vector.broadcast %2 : vector<1x64xf32> to vector<64x64xf32>
    %5 = arith.mulf %3, %4 : vector<64x64xf32>
    %c0_5 = arith.constant 0 : index
    %c0_6 = arith.constant 0 : index
    %6 = vector.load %arg4[%c0_5, %c0_6] : memref<1x64xf32, #tpu.memory_space<vmem>>, vector<1x64xf32>
    %7 = vector.broadcast %1 : vector<64x1xf32> to vector<64x64xf32>
    %8 = vector.broadcast %6 : vector<1x64xf32> to vector<64x64xf32>
    %9 = arith.mulf %7, %8 : vector<64x64xf32>
    %10 = arith.addf %5, %9 : vector<64x64xf32>
    %c0_7 = arith.constant 0 : index
    %c0_8 = arith.constant 0 : index
    %11 = vector.load %arg5[%c0_7, %c0_8] : memref<1x64xf32, #tpu.memory_space<vmem>>, vector<1x64xf32>
    %12 = vector.broadcast %11 : vector<1x64xf32> to vector<64x64xf32>
    %13 = arith.addf %10, %12 : vector<64x64xf32>
    %14 = vector.extract_strided_slice %13 {offsets = [0, 0], sizes = [64, 32], strides = [1, 1]} : vector<64x64xf32> to vector<64x32xf32>
    %15 = vector.extract_strided_slice %13 {offsets = [0, 32], sizes = [64, 32], strides = [1, 1]} : vector<64x64xf32> to vector<64x32xf32>
    %16 = arith.negf %15 : vector<64x32xf32>
    %17 = math.exp %16 : vector<64x32xf32>
    %cst = arith.constant 1.000000e+00 : f32
    %18 = vector.broadcast %cst : f32 to vector<64x32xf32>
    %19 = arith.addf %18, %17 : vector<64x32xf32>
    %20 = arith.divf %18, %19 : vector<64x32xf32>
    %21 = arith.mulf %14, %20 : vector<64x32xf32>
    %c0_9 = arith.constant 0 : index
    %c0_10 = arith.constant 0 : index
    %22 = vector.load %arg6[%c0_9, %c0_10] : memref<32x32xf32, #tpu.memory_space<vmem>>, vector<32x32xf32>
    %cst_11 = arith.constant dense<0.000000e+00> : vector<64x32xf32>
    %23 = tpu.matmul %21, %22, %cst_11 {dimension_numbers = #tpu.dot_dimension_numbers<[1], [0], [0], [1], [0, 0, 1, 1], [], []>} : vector<64x32xf32>, vector<32x32xf32>, vector<64x32xf32> -> vector<64x32xf32>
    %c0_12 = arith.constant 0 : index
    %c0_13 = arith.constant 0 : index
    %24 = vector.load %arg7[%c0_12, %c0_13] : memref<1x32xf32, #tpu.memory_space<vmem>>, vector<1x32xf32>
    %25 = vector.broadcast %24 : vector<1x32xf32> to vector<64x32xf32>
    %26 = arith.addf %23, %25 : vector<64x32xf32>
    %27 = vector.broadcast %1 : vector<64x1xf32> to vector<64x32xf32>
    %28 = arith.addf %26, %27 : vector<64x32xf32>
    %c0_14 = arith.constant 0 : index
    %c0_15 = arith.constant 0 : index
    %29 = vector.load %arg8[%c0_14, %c0_15] : memref<64x32xf32, #tpu.memory_space<vmem>>, vector<64x32xf32>
    tpu.vector_store %arg8[%c0_14, %c0_15], %28 {strides = array<i32>} : memref<64x32xf32, #tpu.memory_space<vmem>>, vector<64x32xf32>,
    %cst_16 = arith.constant dense<0.000000e+00> : vector<32xf32>
    %30 = vector.multi_reduction <add>, %28, %cst_16 [0] : vector<64x32xf32> to vector<32xf32>
    %31 = vector.shape_cast %30 : vector<32xf32> to vector<1x32xf32>
    %32 = arith.mulf %28, %28 : vector<64x32xf32>
    %cst_17 = arith.constant dense<0.000000e+00> : vector<32xf32>
    %33 = vector.multi_reduction <add>, %32, %cst_17 [0] : vector<64x32xf32> to vector<32xf32>
    %34 = vector.shape_cast %33 : vector<32xf32> to vector<1x32xf32>
    %35 = tpu.concatenate %31, %34 in 0 : vector<1x32xf32>, vector<1x32xf32> -> vector<2x32xf32>
    %c0_18 = arith.constant 0 : index
    %c0_19 = arith.constant 0 : index
    %c0_20 = arith.constant 0 : index
    %36 = vector.load %arg9[%c0_18, %c0_19, %c0_20] : memref<1x2x32xf32, #tpu.memory_space<vmem>>, vector<1x2x32xf32>
    %37 = vector.shape_cast %36 : vector<1x2x32xf32> to vector<2x32xf32>
    %38 = vector.shape_cast %35 : vector<2x32xf32> to vector<1x2x32xf32>
    tpu.vector_store %arg9[%c0_18, %c0_19, %c0_20], %38 {strides = array<i32>} : memref<1x2x32xf32, #tpu.memory_space<vmem>>, vector<1x2x32xf32>,
    return
  }
  func.func @transform_0(%arg0: i32) -> (i32, i32) {
    %c0_i32 = arith.constant 0 : i32
    %c0_i32_0 = arith.constant 0 : i32
    return %arg0, %c0_i32 : i32, i32
  }
  func.func @transform_1(%arg0: i32) -> (i32, i32) {
    %c0_i32 = arith.constant 0 : i32
    %c0_i32_0 = arith.constant 0 : i32
    return %arg0, %c0_i32 : i32, i32
  }
  func.func @transform_2(%arg0: i32) -> (i32, i32) {
    %c0_i32 = arith.constant 0 : i32
    %c0_i32_0 = arith.constant 0 : i32
    %c0_i32_1 = arith.constant 0 : i32
    return %c0_i32, %c0_i32_0 : i32, i32
  }
  func.func @transform_3(%arg0: i32) -> (i32, i32) {
    %c0_i32 = arith.constant 0 : i32
    %c0_i32_0 = arith.constant 0 : i32
    %c0_i32_1 = arith.constant 0 : i32
    return %c0_i32, %c0_i32_0 : i32, i32
  }
  func.func @transform_4(%arg0: i32) -> (i32, i32) {
    %c0_i32 = arith.constant 0 : i32
    %c0_i32_0 = arith.constant 0 : i32
    %c0_i32_1 = arith.constant 0 : i32
    return %c0_i32, %c0_i32_0 : i32, i32
  }
  func.func @transform_5(%arg0: i32) -> (i32, i32) {
    %c0_i32 = arith.constant 0 : i32
    %c0_i32_0 = arith.constant 0 : i32
    %c0_i32_1 = arith.constant 0 : i32
    return %c0_i32, %c0_i32_0 : i32, i32
  }
  func.func @transform_6(%arg0: i32) -> (i32, i32) {
    %c0_i32 = arith.constant 0 : i32
    %c0_i32_0 = arith.constant 0 : i32
    %c0_i32_1 = arith.constant 0 : i32
    return %c0_i32, %c0_i32_0 : i32, i32
  }
  func.func @transform_7(%arg0: i32) -> (i32, i32) {
    %c0_i32 = arith.constant 0 : i32
    %c0_i32_0 = arith.constant 0 : i32
    return %arg0, %c0_i32 : i32, i32
  }
  func.func @transform_8(%arg0: i32) -> (i32, i32, i32) {
    %c0_i32 = arith.constant 0 : i32
    %c0_i32_0 = arith.constant 0 : i32
    %c0_i32_1 = arith.constant 0 : i32
    return %arg0, %c0_i32, %c0_i32_0 : i32, i32, i32
  }
}

</mosaic_0001>

<bundles_post_ra>
// kernel: tpu_custom_call.1
= control target key start
LH: loop header
LB: loop body
LE: loop exit
PB: predicated region body
PF: predicated region fallthrough
CT: control target
= control target key end

     0   :  { %14 = vsyncpa [#allocation3], 0  ;;  %s1231_s0 = inlined_call_operand.hbm [shape: f32[64,1], index: 0, kind: input, shape index: {}]   ;;  %s1232_s1 = inlined_call_operand.hbm [shape: f32[64,1], index: 1, kind: input, shape index: {}]   ;;  %s1233_s2 = inlined_call_operand.hbm [shape: f32[1,64], index: 2, kind: input, shape index: {}]   ;;  %s1234_s3 = inlined_call_operand.hbm [shape: f32[1,64], index: 3, kind: input, shape index: {}]   ;;  %s1235_s4 = inlined_call_operand.hbm [shape: f32[1,64], index: 4, kind: input, shape index: {}]   ;;  %s1236_s5 = inlined_call_operand.hbm [shape: f32[32,32], index: 5, kind: input, shape index: {}]   ;;  %s1237_s6 = inlined_call_operand.hbm [shape: f32[1,32], index: 6, kind: input, shape index: {}]   ;;  %s1238_s7 = inlined_call_operand.hbm [shape: f32[64,32], index: 7, kind: output, shape index: {0}]   ;;  %s1239_s8 = inlined_call_operand.hbm [shape: f32[1,2,32], index: 8, kind: output, shape index: {1}]  }
   0x1   :  { %15 = vsyncpa [#allocation6], 0 }
   0x2   :  { %16 = vsyncpa [#allocation9], 0 }
   0x3   :  { %17 = vsyncpa [#allocation12], 0 }
   0x4   :  { %18 = vsyncpa [#allocation4], 0 }
   0x5   :  { %19 = vsyncpa [#allocation16], 0  ;;  %s920_s27 = smov [#allocation5]   ;;  %s921_s29 = smov [#allocation8]  }
   0x6   :  { %s37_s28 = sshll.u32 %s920_s27, 4  ;;  %s60_s30 = sshll.u32 %s921_s29, 4  ;;  %s38_s28 = int_to_ptr.vmem [resolvable:$true] %s37_s28  ;;  %s978_s30 = int_to_ptr.vmem [resolvable:$true] %s60_s30 }
   0x7   :  { %s710_s11 = scalar_lea.hbm %s1232_s1, 1024 }
   0x8   :  { %p711_p0 = scmp.ne.s32.totalorder %s1232_s1, %s710_s11  ;;  %p714_p1 = scmp.lt.u32.totalorder %s710_s11, %s1232_s1 }
   0xa   :  { %p716_p2 = pnand %p714_p1, %p711_p0 }
   0xc   :  { %719 = shalt.err (!%p716_p2)
}
   0xd   :  { %s720_s16 = scalar_lea.vmem %s38_s28, 1024  ;;  %p725_p4 = scmp.lt.s32.totalorder %s38_s28, %s38_s28 }
   0xe   :  { %p721_p3 = scmp.ne.s32.totalorder %s38_s28, %s720_s16  ;;  %p726_p5 = scmp.lt.s32.totalorder %s720_s16, %s720_s16 }
  0x10   :  { %p727_p6 = por %p726_p5, %p725_p4 }
  0x12   :  { %p728_p7 = pnand %p727_p6, %p721_p3 }
  0x14   :  { %731 = shalt.err (!%p728_p7)
}
  0x15   :  { %s922_s17 = smov 128   ;;  %s923_s18 = smov 8  }
  0x16   :  { %43 = dma.hbm_to_vmem [thread:$0]  %s1232_s1, 1024, %s38_s28, [#allocation6], %s922_s17, %s922_s17, %s923_s18  }
  0x17   :  { %s732_s23 = scalar_lea.hbm %s1234_s3, 16 }
  0x18   :  { %p733_p8 = scmp.ne.s32.totalorder %s1234_s3, %s732_s23  ;;  %p736_p9 = scmp.lt.u32.totalorder %s732_s23, %s1234_s3 }
  0x1a   :  { %p738_p10 = pnand %p736_p9, %p733_p8 }
  0x1c   :  { %741 = shalt.err (!%p738_p10)
}
  0x1d   :  { %s742_s29 = scalar_lea.vmem %s978_s30, 16  ;;  %s746_s1 = scalar_lea.vmem %s978_s30, 32 }
  0x1e   :  { %p743_p11 = scmp.ne.s32.totalorder %s978_s30, %s742_s29  ;;  %p747_p12 = scmp.lt.s32.totalorder %s978_s30, %s978_s30 }
  0x1f   :  { %p748_p13 = scmp.lt.s32.totalorder %s746_s1, %s742_s29 }
  0x21   :  { %p749_p0 = por %p748_p13, %p747_p12 }
  0x23   :  { %p750_p1 = pnand %p749_p0, %p743_p11 }
  0x25   :  { %753 = shalt.err (!%p750_p1)
}
  0x26   :  { %63 = dma.hbm_to_vmem [thread:$0]  %s1234_s3, 16, %s978_s30, [#allocation9]  }
  0x27   :  { %s924_s10 = smov [#allocation11]   ;;  %s925_s12 = smov [#allocation2]  }
  0x28   :  { %s79_s11 = sshll.u32 %s924_s10, 4  ;;  %s25_s13 = sshll.u32 %s925_s12, 4  ;;  %s80_s11 = int_to_ptr.vmem [resolvable:$true] %s79_s11  ;;  %s1013_s13 = int_to_ptr.vmem [resolvable:$true] %s25_s13 }
  0x29   :  { %s754_s16 = scalar_lea.hbm %s1236_s5, 512 }
  0x2a   :  { %p755_p2 = scmp.ne.s32.totalorder %s1236_s5, %s754_s16  ;;  %p758_p3 = scmp.lt.u32.totalorder %s754_s16, %s1236_s5 }
  0x2c   :  { %p760_p4 = pnand %p758_p3, %p755_p2 }
  0x2e   :  { %763 = shalt.err (!%p760_p4)
}
  0x2f   :  { %s764_s3 = scalar_lea.vmem %s80_s11, 512  ;;  %p769_p6 = scmp.lt.s32.totalorder %s80_s11, %s80_s11 }
  0x30   :  { %p765_p5 = scmp.ne.s32.totalorder %s80_s11, %s764_s3  ;;  %p770_p7 = scmp.lt.s32.totalorder %s764_s3, %s764_s3 }
  0x32   :  { %p771_p8 = por %p770_p7, %p769_p6 }
  0x34   :  { %p772_p9 = pnand %p771_p8, %p765_p5 }
  0x36   :  { %775 = shalt.err (!%p772_p9)
}
  0x37   :  { %85 = dma.hbm_to_vmem [thread:$0]  %s1236_s5, 512, %s80_s11, [#allocation12], %s922_s17, %s922_s17, %s923_s18  }
  0x38   :  { %s776_s26 = scalar_lea.hbm %s1231_s0, 1024 }
  0x39   :  { %p777_p10 = scmp.ne.s32.totalorder %s1231_s0, %s776_s26  ;;  %p780_p11 = scmp.lt.u32.totalorder %s776_s26, %s1231_s0 }
  0x3b   :  { %p782_p12 = pnand %p780_p11, %p777_p10 }
  0x3d   :  { %785 = shalt.err (!%p782_p12)
}
  0x3e   :  { %s786_s9 = scalar_lea.vmem %s1013_s13, 1024  ;;  %p791_p0 = scmp.lt.s32.totalorder %s1013_s13, %s1013_s13 }
  0x3f   :  { %p787_p13 = scmp.ne.s32.totalorder %s1013_s13, %s786_s9  ;;  %p792_p1 = scmp.lt.s32.totalorder %s786_s9, %s786_s9 }
  0x41   :  { %p793_p2 = por %p792_p1, %p791_p0 }
  0x43   :  { %p794_p3 = pnand %p793_p2, %p787_p13 }
  0x45   :  { %797 = shalt.err (!%p794_p3)
}
  0x46   :  { %31 = dma.hbm_to_vmem [thread:$0]  %s1231_s0, 1024, %s1013_s13, [#allocation3], %s922_s17, %s922_s17, %s923_s18  }
  0x47   :  { %s926_s11 = smov [#allocation7]   ;;  %s927_s14 = smov [#allocation10]  }
  0x48   :  { %s50_s12 = sshll.u32 %s926_s11, 4  ;;  %s70_s15 = sshll.u32 %s927_s14, 4  ;;  %s51_s12 = int_to_ptr.vmem [resolvable:$true] %s50_s12  ;;  %s71_s15 = int_to_ptr.vmem [resolvable:$true] %s70_s15 }
  0x49   :  { %s798_s20 = scalar_lea.hbm %s1233_s2, 16 }
  0x4a   :  { %p799_p4 = scmp.ne.s32.totalorder %s1233_s2, %s798_s20  ;;  %p802_p5 = scmp.lt.u32.totalorder %s798_s20, %s1233_s2 }
  0x4c   :  { %p804_p6 = pnand %p802_p5, %p799_p4 }
  0x4e   :  { %807 = shalt.err (!%p804_p6)
}
  0x4f   :  { %s808_s0 = scalar_lea.vmem %s51_s12, 16  ;;  %s812_s13 = scalar_lea.vmem %s51_s12, 32 }
  0x50   :  { %p809_p7 = scmp.ne.s32.totalorder %s51_s12, %s808_s0  ;;  %p813_p8 = scmp.lt.s32.totalorder %s51_s12, %s51_s12 }
  0x51   :  { %p814_p9 = scmp.lt.s32.totalorder %s812_s13, %s808_s0 }
  0x53   :  { %p815_p10 = por %p814_p9, %p813_p8 }
  0x55   :  { %p816_p11 = pnand %p815_p10, %p809_p7 }
  0x57   :  { %819 = shalt.err (!%p816_p11)
}
  0x58   :  { %53 = dma.hbm_to_vmem [thread:$0]  %s1233_s2, 16, %s51_s12, [#allocation6]  }
  0x59   :  { %s820_s27 = scalar_lea.hbm %s1235_s4, 16 }
  0x5a   :  { %p821_p12 = scmp.ne.s32.totalorder %s1235_s4, %s820_s27  ;;  %p824_p13 = scmp.lt.u32.totalorder %s820_s27, %s1235_s4 }
  0x5c   :  { %p826_p0 = pnand %p824_p13, %p821_p12 }
  0x5e   :  { %829 = shalt.err (!%p826_p0)
}
  0x5f   :  { %s830_s5 = scalar_lea.vmem %s71_s15, 16  ;;  %s834_s10 = scalar_lea.vmem %s71_s15, 32 }
  0x60   :  { %p831_p1 = scmp.ne.s32.totalorder %s71_s15, %s830_s5  ;;  %p835_p2 = scmp.lt.s32.totalorder %s71_s15, %s71_s15 }
  0x61   :  { %p836_p3 = scmp.lt.s32.totalorder %s834_s10, %s830_s5 }
  0x63   :  { %p837_p4 = por %p836_p3, %p835_p2 }
  0x65   :  { %p838_p5 = pnand %p837_p4, %p831_p1 }
  0x67   :  { %841 = shalt.err (!%p838_p5)
}
  0x68   :  { %73 = dma.hbm_to_vmem [thread:$0]  %s1235_s4, 16, %s71_s15, [#allocation9]  }
  0x69   :  { %s928_s12 = smov [#allocation13]   ;;  %s842_s20 = scalar_lea.hbm %s1237_s6, 16 }
  0x6a   :  { %s92_s14 = sshll.u32 %s928_s12, 4  ;;  %p843_p6 = scmp.ne.s32.totalorder %s1237_s6, %s842_s20  ;;  %s93_s14 = int_to_ptr.vmem [resolvable:$true] %s92_s14 }
  0x6b   :  { %p846_p7 = scmp.lt.u32.totalorder %s842_s20, %s1237_s6 }
  0x6d   :  { %p848_p8 = pnand %p846_p7, %p843_p6 }
  0x6f   :  { %851 = shalt.err (!%p848_p8)
}
  0x70   :  { %s852_s0 = scalar_lea.vmem %s93_s14, 16  ;;  %s856_s4 = scalar_lea.vmem %s93_s14, 32 }
  0x71   :  { %p853_p9 = scmp.ne.s32.totalorder %s93_s14, %s852_s0  ;;  %p857_p10 = scmp.lt.s32.totalorder %s93_s14, %s93_s14 }
  0x72   :  { %p858_p11 = scmp.lt.s32.totalorder %s856_s4, %s852_s0 }
  0x74   :  { %p859_p12 = por %p858_p11, %p857_p10 }
  0x76   :  { %p860_p13 = pnand %p859_p12, %p853_p9 }
  0x78   :  { %863 = shalt.err (!%p860_p13)
}
  0x79   :  { %95 = dma.hbm_to_vmem [thread:$0]  %s1237_s6, 16, %s93_s14, [#allocation12]  }
  0x7a   :  { %908 = dma.done.wait [#allocation3], 1024  }
  0x7b   :  { %909 = vsyncadd [#allocation3], 4294966272 }
  0x7c   :  { %910 = dma.done.wait [#allocation6], 1040  }
  0x7d   :  { %911 = vsyncadd [#allocation6], 4294966256 }
  0x7e   :  { %912 = dma.done.wait [#allocation9], 32  }
  0x7f   :  { %913 = vsyncadd [#allocation9], 4294967264 }
  0x80   :  { %914 = dma.done.wait [#allocation12], 528  }
  0x81   :  { %915 = vsyncadd [#allocation12], 4294966768  ;;  %v929_v0 = vmov 0   ;;  %v118_v1 = vld [vmem:[#allocation2 + $0x8] sm:$0xff]  ;;  %v117_v2 = vld [vmem:[#allocation2] sm:$0xff]  ;;  %s930_s6 = smov 96  }
  0x82   :  { %677 = vset.pattern.permute.xlu1 %v929_v0  ;;  %676 = vset.pattern.permute.xlu0 %v929_v0  ;;  %v126_v3 = vld [vmem:[#allocation5 + $0x8] sm:$0xff]  ;;  %v125_v4 = vld [vmem:[#allocation5] sm:$0xff]  ;;  %v127_v5 = vld [vmem:[#allocation5 + $0x10] sm:$0xff]  ;;  %vm365_vm0 = vcmask 261120   ;;  %s931_s23 = smov [#allocation14]  }
  0x83   :  { %141 = vperm.xlu1 %677, %v118_v1   ;;  %136 = vperm.xlu0 %676, %v117_v2   ;;  %v119_v6 = vld [vmem:[#allocation2 + $0x10] sm:$0xff]  ;;  %v128_v7 = vld [vmem:[#allocation5 + $0x18] sm:$0xff]  ;;  %v129_v9 = vld [vmem:[#allocation5 + $0x20] sm:$0xff]  ;;  %s570_s24 = sshll.u32 %s931_s23, 4  ;;  %s571_s24 = int_to_ptr.vmem [resolvable:$true] %s570_s24 }
  0x84   :  { %v120_v8 = vld [vmem:[#allocation2 + $0x18] sm:$0xff]  ;;  %v121_v10 = vld [vmem:[#allocation2 + $0x20] sm:$0xff]  ;;  %v130_v11 = vld [vmem:[#allocation5 + $0x28] sm:$0xff]  ;;  %s864_s25 = scalar_lea.vmem %s571_s24, 1024  ;;  %p869_p1 = scmp.lt.s32.totalorder %s571_s24, %s571_s24 }
  0x85   :  { %v122_v12 = vld [vmem:[#allocation2 + $0x28] sm:$0xff]  ;;  %v131_v13 = vld [vmem:[#allocation5 + $0x30] sm:$0xff]  ;;  %v132_v15 = vld [vmem:[#allocation5 + $0x38] sm:$0xff]  ;;  %p865_p0 = scmp.ne.s32.totalorder %s571_s24, %s864_s25  ;;  %p870_p2 = scmp.lt.s32.totalorder %s864_s25, %s864_s25 }
  0x86   :  { %v123_v14 = vld [vmem:[#allocation2 + $0x30] sm:$0xff]  ;;  %v124_v16 = vld [vmem:[#allocation2 + $0x38] sm:$0xff]  ;;  %v354_v17 = vld [vmem:[#allocation11] sm:$0xff] }
  0x87   :  { %196 = vperm.xlu1 %677, %v126_v3   ;;  %191 = vperm.xlu0 %676, %v125_v4   ;;  %v355_v18 = vld [vmem:[#allocation11 + $0x8] sm:$0xff]  ;;  %v356_v19 = vld [vmem:[#allocation11 + $0x10] sm:$0xff]  ;;  %v357_v21 = vld [vmem:[#allocation11 + $0x18] sm:$0xff]  ;;  %p871_p3 = por %p870_p2, %p869_p1 }
  0x88   :  { %v651_v20 = vpack.c.bf16 %v355_v18, %v354_v17  ;;  %v655_v22 = vpack.c.bf16 %v357_v21, %v356_v19  ;;  %v1086_v25 = vld [vmem:[#allocation7] ss:$0 sm:$0xff]  ;;  %v1088_v26 = vld [vmem:[#allocation8] ss:$0 sm:$0xff]  ;;  %v1100_v33 = vld [vmem:[#allocation10] ss:$0 sm:$0xff] }
  0x89   :  { %p872_p4 = pnand %p871_p3, %p865_p0 }
  0x8a   :  { %652 = vmatprep.subr.bf16.mxu0 %v651_v20  ;;  %659 = vmatprep.subr.bf16.mxu1 %v651_v20 }
  0x8b   :  { %201 = vperm.xlu1 %677, %v127_v5   ;;  %146 = vperm.xlu0 %676, %v119_v6  }
  0x8c   :  { %654 = vmatpush3.bf16.msra.mxu0 %v651_v20  ;;  %661 = vmatpush3.bf16.msra.mxu1 %v651_v20 }
  0x8d   :  { %656 = vmatprep.subr.bf16.mxu0 %v655_v22  ;;  %660 = vmatprep.subr.bf16.mxu1 %v655_v22 }
  0x8f   :  { %206 = vperm.xlu1 %677, %v128_v7   ;;  %151 = vperm.xlu0 %676, %v120_v8  }
  0x90   :  { %658 = vmatpush3.bf16.msra.mxu0 %v655_v22  ;;  %662 = vmatpush3.bf16.msra.mxu1 %v655_v22 }
  0x93   :  { %211 = vperm.xlu1 %677, %v129_v9   ;;  %156 = vperm.xlu0 %676, %v121_v10  }
  0x97   :  { %216 = vperm.xlu1 %677, %v130_v11   ;;  %161 = vperm.xlu0 %676, %v122_v12  }
  0x9b   :  { %221 = vperm.xlu1 %677, %v131_v13   ;;  %166 = vperm.xlu0 %676, %v123_v14  }
  0x9f   :  { %226 = vperm.xlu1 %677, %v132_v15   ;;  %171 = vperm.xlu0 %676, %v124_v16  }
 0x102   :  { %v142_v23 = vpop.permute.xlu1 %141  ;;  %v137_v24 = vpop.permute.xlu0 %136 }
 0x103   :  { %v181_v29 = vmul.f32 %v1086_v25, %v142_v23  ;;  %v180_v30 = vmul.f32 %v1086_v25, %v137_v24 }
 0x106   :  { %v1090_v27 = vpop.permute.xlu1 %196  ;;  %v1092_v28 = vpop.permute.xlu0 %191 }
 0x107   :  { %v236_v31 = vmul.f32 %v1088_v26, %v1090_v27  ;;  %v235_v32 = vmul.f32 %v1088_v26, %v1092_v28 }
 0x109   :  { %v244_v34 = vadd.f32 %v236_v31, %v181_v29  ;;  %v243_v35 = vadd.f32 %v235_v32, %v180_v30 }
 0x10a   :  { %v1102_v36 = vpop.permute.xlu1 %201  ;;  %v147_v37 = vpop.permute.xlu0 %146 }
 0x10b   :  { %v1105_v38 = vadd.f32 %v1100_v33, %v244_v34  ;;  %v1108_v39 = vadd.f32 %v1100_v33, %v243_v35  ;;  %v237_v40 = vmul.f32 %v1088_v26, %v1102_v36  ;;  %v182_v41 = vmul.f32 %v1086_v25, %v147_v37 }
 0x10d   :  { %v603_v42 = vmul.f32 -1.442695, %v1105_v38  ;;  %v602_v43 = vmul.f32 -1.442695, %v1108_v39  ;;  %v245_v44 = vadd.f32 %v237_v40, %v182_v41 }
 0x10e   :  { %v1115_v45 = vpop.permute.xlu1 %206  ;;  %v152_v46 = vpop.permute.xlu0 %151 }
 0x10f   :  { %678 = vpow2.f32 %v603_v42  ;;  %v1118_v47 = vadd.f32 %v1100_v33, %v245_v44  ;;  %v238_v48 = vmul.f32 %v1088_v26, %v1115_v45  ;;  %v183_v49 = vmul.f32 %v1086_v25, %v152_v46 }
 0x110   :  { %680 = vpow2.f32 %v602_v43 }
 0x111   :  { %v604_v50 = vmul.f32 -1.442695, %v1118_v47  ;;  %v246_v51 = vadd.f32 %v238_v48, %v183_v49 }
 0x112   :  { %v1124_v52 = vpop.permute.xlu1 %211  ;;  %v157_v53 = vpop.permute.xlu0 %156 }
 0x113   :  { %682 = vpow2.f32 %v604_v50  ;;  %v1127_v54 = vadd.f32 %v1100_v33, %v246_v51  ;;  %v239_v55 = vmul.f32 %v1088_v26, %v1124_v52  ;;  %v184_v56 = vmul.f32 %v1086_v25, %v157_v53 }
 0x115   :  { %v605_v57 = vmul.f32 -1.442695, %v1127_v54  ;;  %v247_v58 = vadd.f32 %v239_v55, %v184_v56 }
 0x116   :  { %v1133_v59 = vpop.permute.xlu1 %216  ;;  %v162_v60 = vpop.permute.xlu0 %161 }
 0x117   :  { %684 = vpow2.f32 %v605_v57  ;;  %v1136_v61 = vadd.f32 %v1100_v33, %v247_v58  ;;  %v240_v62 = vmul.f32 %v1088_v26, %v1133_v59  ;;  %v185_v63 = vmul.f32 %v1086_v25, %v162_v60 }
 0x119   :  { %v679_v0 = vpop.eup %678  ;;  %v606_v1 = vmul.f32 -1.442695, %v1136_v61  ;;  %v248_v2 = vadd.f32 %v240_v62, %v185_v63 }
 0x11a   :  { %v681_v3 = vpop.eup %680  ;;  %v291_v4 = vadd.f32 1.0, %v679_v0  ;;  %v1142_v5 = vpop.permute.xlu1 %221 }
 0x11b   :  { %v167_v6 = vpop.permute.xlu0 %166  ;;  %v290_v7 = vadd.f32 1.0, %v681_v3  ;;  %686 = vpow2.f32 %v606_v1  ;;  %v1145_v8 = vadd.f32 %v1100_v33, %v248_v2  ;;  %v241_v9 = vmul.f32 %v1088_v26, %v1142_v5 }
 0x11c   :  { %688 = vrcp.f32 %v291_v4  ;;  %v186_v10 = vmul.f32 %v1086_v25, %v167_v6 }
 0x11d   :  { %v683_v11 = vpop.eup %682  ;;  %690 = vrcp.f32 %v290_v7  ;;  %v607_v12 = vmul.f32 -1.442695, %v1145_v8 }
 0x11e   :  { %v292_v13 = vadd.f32 1.0, %v683_v11  ;;  %v249_v14 = vadd.f32 %v241_v9, %v186_v10  ;;  %v1151_v15 = vpop.permute.xlu1 %226 }
 0x11f   :  { %v172_v16 = vpop.permute.xlu0 %171  ;;  %692 = vpow2.f32 %v607_v12  ;;  %v242_v17 = vmul.f32 %v1088_v26, %v1151_v15 }
 0x120   :  { %v187_v18 = vmul.f32 %v1086_v25, %v172_v16  ;;  %694 = vrcp.f32 %v292_v13  ;;  %v264_v19 = vadd.f32 %v1100_v33, %v249_v14 }
 0x121   :  { %v685_v20 = vpop.eup %684 }
 0x122   :  { %v250_v21 = vadd.f32 %v242_v17, %v187_v18  ;;  %v293_v22 = vadd.f32 1.0, %v685_v20  ;;  %v608_v23 = vmul.f32 -1.442695, %v264_v19 }
 0x124   :  { %v265_v24 = vadd.f32 %v1100_v33, %v250_v21  ;;  %696 = vrcp.f32 %v293_v22 }
 0x125   :  { %v687_v29 = vpop.eup %686  ;;  %698 = vpow2.f32 %v608_v23 }
 0x126   :  { %v609_v30 = vmul.f32 -1.442695, %v265_v24  ;;  %v689_v31 = vpop.eup %688  ;;  %v294_v32 = vadd.f32 1.0, %v687_v29 }
 0x127   :  { %v691_v34 = vpop.eup %690  ;;  %324 = vrot.lane.b32.xlu1 %v689_v31, %s930_s6 }
 0x128   :  { %700 = vpow2.f32 %v609_v30  ;;  %322 = vrot.lane.b32.xlu0 %v691_v34, %s930_s6 }
 0x129   :  { %702 = vrcp.f32 %v294_v32  ;;  %v693_v25 = vpop.eup %692 }
 0x12a   :  { %v695_v26 = vpop.eup %694  ;;  %v295_v35 = vadd.f32 1.0, %v693_v25 }
 0x12c   :  { %704 = vrcp.f32 %v295_v35  ;;  %326 = vrot.lane.b32.xlu0 %v695_v26, %s930_s6 }
 0x12e   :  { %v697_v37 = vpop.eup %696 }
 0x12f   :  { %v699_v40 = vpop.eup %698  ;;  %328 = vrot.lane.b32.xlu1 %v697_v37, %s930_s6 }
 0x130   :  { %v296_v33 = vadd.f32 1.0, %v699_v40 }
 0x132   :  { %v701_v41 = vpop.eup %700  ;;  %706 = vrcp.f32 %v296_v33 }
 0x133   :  { %v703_v42 = vpop.eup %702  ;;  %v297_v43 = vadd.f32 1.0, %v701_v41 }
 0x134   :  { %330 = vrot.lane.b32.xlu0 %v703_v42, %s930_s6 }
 0x135   :  { %708 = vrcp.f32 %v297_v43 }
 0x136   :  { %v705_v44 = vpop.eup %704 }
 0x137   :  { %332 = vrot.lane.b32.xlu1 %v705_v44, %s930_s6 }
 0x13c   :  { %v707_v46 = vpop.eup %706 }
 0x13d   :  { %334 = vrot.lane.b32.xlu0 %v707_v46, %s930_s6 }
 0x13f   :  { %v709_v48 = vpop.eup %708 }
 0x140   :  { %336 = vrot.lane.b32.xlu1 %v709_v48, %s930_s6 }
 0x199   :  { %v325_v49 = vpop.permute.xlu1 %324 }
 0x19a   :  { %v347_v50 = vmul.f32 %v325_v49, %v1105_v38  ;;  %v323_v51 = vpop.permute.xlu0 %322 }
 0x19b   :  { %v346_v53 = vmul.f32 %v323_v51, %v1108_v39 }
 0x19d   :  { %639 = vmatprep.mubr.msk.f32.mxu0 %vm365_vm0, %v346_v53 }
 0x19e   :  { %640 = vmatmul.mubr.msk.f32.vlgmr.msra.gmra.mrb[0].mxu0 %vm365_vm0, %v347_v50  ;;  %v327_v55 = vpop.permute.xlu0 %326 }
 0x19f   :  { %v348_v56 = vmul.f32 %v327_v55, %v1118_v47 }
 0x1a1   :  { %642 = vmatprep.mubr.msk.f32.mxu0 %vm365_vm0, %v348_v56  ;;  %v329_v57 = vpop.permute.xlu1 %328 }
 0x1a2   :  { %v349_v58 = vmul.f32 %v329_v57, %v1127_v54  ;;  %v610_v54 = vld [vmem:[#allocation13] ss:$0 sm:$0xff] }
 0x1a4   :  { %643 = vmatmul.mubr.msk.f32.gmra.mrb[2].mxu0 %vm365_vm0, %v349_v58 }
 0x1a6   :  { %v331_v60 = vpop.permute.xlu0 %330 }
 0x1a7   :  { %v350_v38 = vmul.f32 %v331_v60, %v1136_v61 }
 0x1a9   :  { %645 = vmatprep.mubr.msk.f32.mxu1 %vm365_vm0, %v350_v38  ;;  %v333_v39 = vpop.permute.xlu1 %332 }
 0x1aa   :  { %v351_v62 = vmul.f32 %v333_v39, %v1145_v8 }
 0x1ac   :  { %646 = vmatmul.mubr.msk.f32.vlgmr.msra.gmra.mrb[0].mxu1 %vm365_vm0, %v351_v62 }
 0x1af   :  { %v335_v63 = vpop.permute.xlu0 %334 }
 0x1b0   :  { %v352_v0 = vmul.f32 %v335_v63, %v264_v19 }
 0x1b2   :  { %v337_v47 = vpop.permute.xlu1 %336  ;;  %648 = vmatprep.mubr.msk.f32.mxu1 %vm365_vm0, %v352_v0 }
 0x1b3   :  { %v353_v1 = vmul.f32 %v337_v47, %v265_v24 }
 0x1b5   :  { %649 = vmatmul.mubr.msk.f32.gmra.mrb[2].mxu1 %vm365_vm0, %v353_v1 }
 0x271   :  { %v641_v2 = vpop.f32.mrb[0].mxu0 }
 0x272   :  { %v462_v3 = vadd.f32 %v641_v2, %v610_v54  ;;  %v456_v4 = vpop.f32.mrb[1].mxu0 }
 0x273   :  { %v457_v61 = vadd.f32 %v610_v54, %v456_v4 }
 0x274   :  { %v496_v6 = vadd.f32 %v462_v3, %v1090_v27 }
 0x275   :  { %v495_v7 = vadd.f32 %v457_v61, %v1092_v28 }
 0x276   :  { %504 = vst.msk [vmem:[#allocation14 + $0x8] sm:$0xff] %vm365_vm0, %v496_v6  ;;  %v512_v8 = vsel %vm365_vm0, %v496_v6, 0.0  ;;  %v533_v9 = vmul.f32 %v496_v6, %v496_v6 }
 0x277   :  { %503 = vst.msk [vmem:[#allocation14] sm:$0xff] %vm365_vm0, %v495_v7  ;;  %v511_v10 = vsel %vm365_vm0, %v495_v7, 0.0  ;;  %v532_v11 = vmul.f32 %v495_v7, %v495_v7  ;;  %v644_v12 = vpop.f32.mrb[2].mxu0 }
 0x278   :  { %v541_v13 = vsel %vm365_vm0, %v533_v9, 0.0  ;;  %v513_v14 = vadd.f32 %v512_v8, %v511_v10  ;;  %v472_v16 = vadd.f32 %v644_v12, %v610_v54  ;;  %v466_v17 = vpop.f32.mrb[3].mxu0 }
 0x279   :  { %v540_v27 = vsel %vm365_vm0, %v532_v11, 0.0  ;;  %v467_v18 = vadd.f32 %v610_v54, %v466_v17 }
 0x27a   :  { %v542_v28 = vadd.f32 %v541_v13, %v540_v27  ;;  %v498_v19 = vadd.f32 %v472_v16, %v1115_v45 }
 0x27b   :  { %v497_v20 = vadd.f32 %v467_v18, %v1102_v36 }
 0x27c   :  { %506 = vst.msk [vmem:[#allocation14 + $0x18] sm:$0xff] %vm365_vm0, %v498_v19  ;;  %v535_v21 = vmul.f32 %v498_v19, %v498_v19  ;;  %v516_v29 = vsel %vm365_vm0, %v498_v19, 0.0 }
 0x27d   :  { %505 = vst.msk [vmem:[#allocation14 + $0x10] sm:$0xff] %vm365_vm0, %v497_v20  ;;  %v514_v22 = vsel %vm365_vm0, %v497_v20, 0.0  ;;  %v534_v23 = vmul.f32 %v497_v20, %v497_v20 }
 0x27e   :  { %v515_v24 = vadd.f32 %v514_v22, %v513_v14  ;;  %v545_v36 = vsel %vm365_vm0, %v535_v21, 0.0 }
 0x27f   :  { %v543_v30 = vsel %vm365_vm0, %v534_v23, 0.0  ;;  %v647_v31 = vpop.f32.mrb[0].mxu1 }
 0x280   :  { %v544_v32 = vadd.f32 %v543_v30, %v542_v28  ;;  %v482_v34 = vadd.f32 %v647_v31, %v610_v54  ;;  %v476_v25 = vpop.f32.mrb[1].mxu1  ;;  %v517_v45 = vadd.f32 %v516_v29, %v515_v24 }
 0x281   :  { %v477_v26 = vadd.f32 %v610_v54, %v476_v25 }
 0x282   :  { %v500_v35 = vadd.f32 %v482_v34, %v1133_v59  ;;  %v546_v37 = vadd.f32 %v545_v36, %v544_v32 }
 0x283   :  { %v499_v40 = vadd.f32 %v477_v26, %v1124_v52 }
 0x284   :  { %508 = vst.msk [vmem:[#allocation14 + $0x28] sm:$0xff] %vm365_vm0, %v500_v35  ;;  %v537_v33 = vmul.f32 %v500_v35, %v500_v35  ;;  %v520_v44 = vsel %vm365_vm0, %v500_v35, 0.0 }
 0x285   :  { %507 = vst.msk [vmem:[#allocation14 + $0x20] sm:$0xff] %vm365_vm0, %v499_v40  ;;  %v518_v41 = vsel %vm365_vm0, %v499_v40, 0.0  ;;  %v536_v42 = vmul.f32 %v499_v40, %v499_v40 }
 0x286   :  { %v519_v43 = vadd.f32 %v518_v41, %v517_v45  ;;  %v549_v52 = vsel %vm365_vm0, %v537_v33, 0.0 }
 0x287   :  { %v547_v46 = vsel %vm365_vm0, %v536_v42, 0.0 }
 0x288   :  { %v650_v48 = vpop.f32.mrb[2].mxu1  ;;  %v548_v49 = vadd.f32 %v547_v46, %v546_v37  ;;  %v521_v51 = vadd.f32 %v520_v44, %v519_v43 }
 0x289   :  { %v492_v50 = vadd.f32 %v650_v48, %v610_v54  ;;  %v486_v59 = vpop.f32.mrb[3].mxu1 }
 0x28a   :  { %v487_v53 = vadd.f32 %v610_v54, %v486_v59  ;;  %v550_v56 = vadd.f32 %v549_v52, %v548_v49 }
 0x28b   :  { %v502_v55 = vadd.f32 %v492_v50, %v1151_v15 }
 0x28c   :  { %v501_v57 = vadd.f32 %v487_v53, %v1142_v5 }
 0x28d   :  { %510 = vst.msk [vmem:[#allocation14 + $0x38] sm:$0xff] %vm365_vm0, %v502_v55  ;;  %v539_v58 = vmul.f32 %v502_v55, %v502_v55 }
 0x28e   :  { %509 = vst.msk [vmem:[#allocation14 + $0x30] sm:$0xff] %vm365_vm0, %v501_v57  ;;  %v522_v60 = vsel %vm365_vm0, %v501_v57, 0.0  ;;  %v538_v38 = vmul.f32 %v501_v57, %v501_v57 }
 0x28f   :  { %v523_v39 = vadd.f32 %v522_v60, %v521_v51 }
 0x290   :  { %875 = shalt.err (!%p872_p4)
}
 0x291   :  { %s876_s29 = scalar_lea.hbm %s1238_s7, 1024 }
 0x292   :  { %p877_p5 = scmp.ne.s32.totalorder %s1238_s7, %s876_s29  ;;  %p880_p6 = scmp.lt.u32.totalorder %s876_s29, %s1238_s7 }
 0x294   :  { %p882_p7 = pnand %p880_p6, %p877_p5 }
 0x296   :  { %885 = shalt.err (!%p882_p7)
}
 0x297   :  { %576 = dma.vmem_to_hbm [thread:$0]  %s571_s24, 1024, %s1238_s7, [#allocation4], %s922_s17, %s922_s17, %s923_s18   ;;  %v524_v5 = vsel %vm365_vm0, %v502_v55, 0.0  ;;  %v551_v15 = vsel %vm365_vm0, %v538_v38, 0.0  ;;  %v553_v0 = vsel %vm365_vm0, %v539_v58, 0.0  ;;  %vm561_vm1 = vcmask 1040384  }
 0x298   :  { %v525_v62 = vadd.f32 %v524_v5, %v523_v39  ;;  %v552_v63 = vadd.f32 %v551_v15, %v550_v56  ;;  %s932_s7 = smov [#allocation15]   ;;  %vm563_vm2 = vcmask 254976  }
 0x299   :  { %s583_s17 = sshll.u32 %s932_s7, 4  ;;  %s584_s17 = int_to_ptr.vmem [resolvable:$true] %s583_s17 }
 0x29a   :  { %v526_v47 = vrot.slane %v525_v62, 4  ;;  %v554_v1 = vadd.f32 %v553_v0, %v552_v63  ;;  %s886_s18 = scalar_lea.vmem %s584_s17, 32  ;;  %p891_p9 = scmp.lt.s32.totalorder %s584_s17, %s584_s17 }
 0x29b   :  { %p887_p8 = scmp.ne.s32.totalorder %s584_s17, %s886_s18  ;;  %p892_p10 = scmp.lt.s32.totalorder %s886_s18, %s886_s18 }
 0x29c   :  { %v527_v54 = vadd.f32 %v526_v47, %v525_v62  ;;  %v555_v2 = vrot.slane %v554_v1, 4 }
 0x29d   :  { %p893_p11 = por %p892_p10, %p891_p9 }
 0x29e   :  { %v528_v3 = vrot.slane %v527_v54, 2  ;;  %v556_v4 = vadd.f32 %v555_v2, %v554_v1 }
 0x29f   :  { %p894_p12 = pnand %p893_p11, %p887_p8 }
 0x2a0   :  { %v529_v61 = vadd.f32 %v528_v3, %v527_v54  ;;  %v557_v6 = vrot.slane %v556_v4, 2 }
 0x2a2   :  { %v530_v7 = vrot.slane %v529_v61, 1  ;;  %v558_v8 = vadd.f32 %v557_v6, %v556_v4 }
 0x2a4   :  { %v559_v9 = vrot.slane %v558_v8, 1  ;;  %v531_v10 = vadd.f32 %v530_v7, %v529_v61 }
 0x2a6   :  { %v560_v11 = vadd.f32 %v559_v9, %v558_v8 }
 0x2a8   :  { %v562_v12 = vsel %vm561_vm1, %v531_v10, %v560_v11 }
 0x2a9   :  { %564 = vst.msk [vmem:[#allocation15] sm:$0x3] %vm563_vm2, %v562_v12 }
 0x2aa   :  { %897 = shalt.err (!%p894_p12)
}
 0x2ab   :  { %s898_s14 = scalar_lea.hbm %s1239_s8, 32 }
 0x2ac   :  { %p899_p13 = scmp.ne.s32.totalorder %s1239_s8, %s898_s14  ;;  %p902_p0 = scmp.lt.u32.totalorder %s898_s14, %s1239_s8 }
 0x2ae   :  { %p904_p1 = pnand %p902_p0, %p899_p13 }
 0x2b0   :  { %907 = shalt.err (!%p904_p1)
}
 0x2b1   :  { %586 = dma.vmem_to_hbm [thread:$0]  %s584_s17, 32, %s1239_s8, [#allocation16]  }
 0x2b2   :  { %916 = dma.done.wait [#allocation4], 1024  }
 0x2b3   :  { %917 = vsyncadd [#allocation4], 4294966272 }
 0x2b4   :  { %918 = dma.done.wait [#allocation16], 32  }
 0x2b5   :  { %919 = vsyncadd [#allocation16], 4294967264 }
 0x2b6   :  { %593 = vsyncpa [#allocation3], 1 }
 0x2b7   :  { %594 = vsyncpa [#allocation6], 1 }
 0x2b8   :  { %595 = vsyncpa [#allocation9], 1 }
 0x2b9   :  { %596 = vsyncpa [#allocation12], 1 }
 0x2ba   :  { %597 = vsyncpa [#allocation4], 1 }
 0x2bb   :  { %598 = vsyncpa [#allocation16], 1 }

</bundles_post_ra>
